<compile_context>
chip_gen: v7x
topology: tpu7x:2x2x1
jax: 0.10.0
libtpu: 0.0.40
codegen_flags: <defaults>
</compile_context>

<pallas_src>
import functools

import jax
import jax.numpy as jnp
from jax import lax
from jax.experimental import pallas as pl
from jax.experimental.pallas import tpu as pltpu

EPS = 1e-6
LANE = 128


def _round_up(x, m):
    return (x + m - 1) // m * m


def ffn_kernel(x_ref, w1_ref, b1_ref, w2_ref, b2_ref, gamma_ref, beta_ref,
               o_ref, acc_ref, *, d_true):
    # x_ref:   (tm, Dp)  input rows (resident across the hidden grid axis)
    # w1_ref:  (Dp, tH)  bf16 FC1 weight slice   | b1_ref: (1, tH)
    # w2_ref:  (tH, Dp)  bf16 FC2 weight slice   | b2/gamma/beta: (1, Dp)
    # acc_ref: (tm, Dp)  f32 FC2 accumulator scratch (persists across grid steps)
    hj = pl.program_id(1)

    @pl.when(hj == 0)
    def _():
        acc_ref[...] = jnp.zeros_like(acc_ref)

    x_bf16 = x_ref[...].astype(jnp.bfloat16)

    # FC1 slice + ReLU (bf16 MXU operands, f32 accumulation).
    h = jnp.dot(x_bf16, w1_ref[...], preferred_element_type=jnp.float32)
    h = jnp.maximum(h + b1_ref[...].astype(jnp.float32), 0.0)

    # FC2 partial product accumulated over hidden tiles.
    acc_ref[...] += jnp.dot(h.astype(jnp.bfloat16), w2_ref[...],
                            preferred_element_type=jnp.float32)

    @pl.when(hj == pl.num_programs(1) - 1)
    def _():
        # Residual (dropout == identity in eval mode) + output bias.
        r = acc_ref[...] + b2_ref[...].astype(jnp.float32) \
            + x_ref[...].astype(jnp.float32)

        d_pad = r.shape[-1]
        if d_true == d_pad:
            mean = jnp.mean(r, axis=-1, keepdims=True)
            cent = r - mean
            var = jnp.mean(cent * cent, axis=-1, keepdims=True)
        else:
            # Padded lanes of r are exactly zero (x / W1 / W2 / b1 / b2 pads are zero),
            # so the mean needs no mask; only center-mask for the variance.
            inv_d = 1.0 / d_true
            mean = jnp.sum(r, axis=-1, keepdims=True) * inv_d
            mask = (lax.broadcasted_iota(jnp.int32, r.shape, 1) < d_true
                    ).astype(jnp.float32)
            cent = (r - mean) * mask
            var = jnp.sum(cent * cent, axis=-1, keepdims=True) * inv_d

        normed = cent * lax.rsqrt(var + EPS)          # rsqrt -> EUP slot (free filler)
        o_ref[...] = (normed * gamma_ref[...].astype(jnp.float32)
                      + beta_ref[...].astype(jnp.float32)).astype(o_ref.dtype)


def _choose_hidden_tile(d_pad, h_pad128, *, weight_budget_bytes=16 << 20):
    """Largest 128-multiple hidden tile keeping bf16 W1+W2 slices under budget.
    If the full weights fit the budget, keep them fully resident (single hidden step)."""
    per_128 = 2 * d_pad * 128 * 2          # bytes of (W1 + W2) per 128 hidden columns (bf16)
    if per_128 * (h_pad128 // 128) <= weight_budget_bytes:
        return h_pad128                    # fully resident, one hidden step
    n128 = max(1, weight_budget_bytes // (2 * per_128))   # /2: streamed slices are double-buffered
    return min(h_pad128, n128 * 128)


def _vmem_limit_bytes():
    """Scoped-VMEM limit with headroom, derived from the actual chip."""
    try:
        cap = int(pltpu.get_tpu_info().vmem_capacity_bytes)
    except Exception:
        return None                        # fall back to compiler default
    # >=16 MiB headroom for compiler-internal scratch / semaphores; never ask for >112 MiB.
    return max(32 << 20, min(cap - (16 << 20), 112 << 20))


def prepare_ffn_params(w1, b1, w2, b2, gamma, beta, *, weight_budget_bytes=16 << 20):
    """Pad + bf16-cast parameters ONCE (hoisted out of the per-call path)."""
    D, H = w1.shape
    assert w2.shape == (H, D)
    assert b1.shape == (H,) and b2.shape == (D,)
    assert gamma.shape == (D,) and beta.shape == (D,)

    Dp = _round_up(D, LANE)
    h128 = _round_up(H, LANE)
    tH = _choose_hidden_tile(Dp, h128, weight_budget_bytes=weight_budget_bytes)
    Hp = _round_up(H, tH)

    w1_p = jnp.zeros((Dp, Hp), jnp.bfloat16).at[:D, :H].set(w1.astype(jnp.bfloat16))
    w2_p = jnp.zeros((Hp, Dp), jnp.bfloat16).at[:H, :D].set(w2.astype(jnp.bfloat16))
    b1_p = jnp.zeros((1, Hp), jnp.float32).at[0, :H].set(b1.astype(jnp.float32))
    b2_p = jnp.zeros((1, Dp), jnp.float32).at[0, :D].set(b2.astype(jnp.float32))
    g_p = jnp.zeros((1, Dp), jnp.float32).at[0, :D].set(gamma.astype(jnp.float32))
    bt_p = jnp.zeros((1, Dp), jnp.float32).at[0, :D].set(beta.astype(jnp.float32))

    return dict(w1=w1_p, b1=b1_p, w2=w2_p, b2=b2_p, gamma=g_p, beta=bt_p,
                d_true=D, h_true=H, d_pad=Dp, h_pad=Hp, t_h=tH)


def position_wise_ffn(x, params, *, tm=512):
    """x: [..., D].  params: output of prepare_ffn_params.  Returns same shape/dtype."""
    orig_shape = x.shape
    D = params["d_true"]
    Dp, Hp, tH = params["d_pad"], params["h_pad"], params["t_h"]
    assert x.shape[-1] == D

    N = 1
    for s in orig_shape[:-1]:
        N *= s
    x2 = x.reshape(N, D)

    # Row tile: full-extent single block for small N, multiple of 256 otherwise (full MXU passes).
    if N <= tm:
        tm_eff = _round_up(N, 8)
    else:
        tm_eff = _round_up(tm, 256)
    Np = _round_up(N, tm_eff)

    # Keep activations in their source dtype; skip the pad/copy when already aligned.
    if Np == N and Dp == D:
        x_p = x2
    else:
        x_p = jnp.zeros((Np, Dp), x2.dtype).at[:N, :D].set(x2)

    n_h = Hp // tH
    grid = (Np // tm_eff, n_h)

    resident = dict(pipeline_mode=pl.Buffered(1))   # single-buffer grid-invariant blocks
    w_kw = resident if n_h == 1 else {}             # weights resident when one hidden step,
                                                    # streamed (double-buffered) otherwise

    in_specs = [
        pl.BlockSpec((tm_eff, Dp), lambda i, j: (i, 0)),            # x rows (resident over j)
        pl.BlockSpec((Dp, tH), lambda i, j: (0, j), **w_kw),        # W1 slice
        pl.BlockSpec((1, tH), lambda i, j: (0, j), **w_kw),         # b1 slice
        pl.BlockSpec((tH, Dp), lambda i, j: (j, 0), **w_kw),        # W2 slice
        pl.BlockSpec((1, Dp), lambda i, j: (0, 0), **resident),     # b2
        pl.BlockSpec((1, Dp), lambda i, j: (0, 0), **resident),     # gamma
        pl.BlockSpec((1, Dp), lambda i, j: (0, 0), **resident),     # beta
    ]
    out_specs = pl.BlockSpec((tm_eff, Dp), lambda i, j: (i, 0))     # lane-dense stores

    itemsize = x.dtype.itemsize
    cost = pl.CostEstimate(
        flops=4 * Np * Dp * Hp,                       # two matmuls
        transcendentals=Np,                           # one rsqrt per row
        bytes_accessed=2 * Np * Dp * itemsize         # x in + out
        + (params["w1"].size + params["w2"].size) * 2 # bf16 weights
        + (params["b1"].size + params["b2"].size
           + params["gamma"].size + params["beta"].size) * 4,
    )

    cp_kwargs = dict(dimension_semantics=("parallel", "arbitrary"))
    vl = _vmem_limit_bytes()
    if vl is not None:
        cp_kwargs["vmem_limit_bytes"] = vl

    out = pl.pallas_call(
        functools.partial(ffn_kernel, d_true=D),
        out_shape=jax.ShapeDtypeStruct((Np, Dp), x.dtype),
        grid_spec=pltpu.PrefetchScalarGridSpec(
            num_scalar_prefetch=0,
            grid=grid,
            in_specs=in_specs,
            out_specs=out_specs,
            scratch_shapes=[pltpu.VMEM((tm_eff, Dp), jnp.float32)],  # FC2 accumulator
        ),
        compiler_params=pltpu.CompilerParams(**cp_kwargs),
        cost_estimate=cost,
    )(x_p, params["w1"], params["b1"], params["w2"], params["b2"],
      params["gamma"], params["beta"])

    if Np == N and Dp == D:
        return out.reshape(orig_shape)
    return out[:N, :D].reshape(orig_shape)


def reference(x, w1, b1, w2, b2, gamma, beta):
    xf = x.astype(jnp.float32)
    h = jnp.maximum(xf @ w1 + b1, 0.0)
    y = h @ w2 + b2
    r = xf + y
    mean = jnp.mean(r, axis=-1, keepdims=True)
    var = jnp.mean((r - mean) ** 2, axis=-1, keepdims=True)
    return ((r - mean) * lax.rsqrt(var + EPS)) * gamma + beta


def _make_params(key, D, H):
    k_w1, k_b1, k_w2, k_b2 = jax.random.split(key, 4)
    lim1 = 1.0 / jnp.sqrt(D)
    lim2 = 1.0 / jnp.sqrt(H)
    w1 = jax.random.uniform(k_w1, (D, H), jnp.float32, -lim1, lim1)
    b1 = jax.random.uniform(k_b1, (H,), jnp.float32, -lim1, lim1)
    w2 = jax.random.uniform(k_w2, (H, D), jnp.float32, -lim2, lim2)
    b2 = jax.random.uniform(k_b2, (D,), jnp.float32, -lim2, lim2)
    gamma = jnp.ones((D,), jnp.float32)
    beta = jnp.zeros((D,), jnp.float32)
    return w1, b1, w2, b2, gamma, beta


if __name__ == "__main__":
    key = jax.random.PRNGKey(0)
    k1, k2, k3, k4, k5, k6 = jax.random.split(key, 6)
    batch, seq = 2, 8

    # Case 1: lane-aligned shapes (no padding, no x copy, resident weights).
    D, H = 128, 256
    x = jax.random.normal(k1, (batch, seq, D), dtype=jnp.float32)
    raw = _make_params(k2, D, H)
    prepped = prepare_ffn_params(*raw)
    out = jax.block_until_ready(position_wise_ffn(x, prepped))
    ref = reference(x, *raw)
    assert out.shape == x.shape
    # bf16 weights inside the kernel vs f32 reference -> loosened tolerance (documented numerics change).
    assert jnp.allclose(out, ref, atol=2e-2, rtol=2e-2), "mismatch vs reference (aligned)"

    # Case 2: unaligned dims exercise lane padding + masked-LayerNorm path.
    D2, H2 = 96, 200
    x2 = jax.random.normal(k3, (batch, seq, D2), dtype=jnp.float32)
    raw2 = _make_params(k4, D2, H2)
    prepped2 = prepare_ffn_params(*raw2)
    out2 = jax.block_until_ready(position_wise_ffn(x2, prepped2))
    ref2 = reference(x2, *raw2)
    assert out2.shape == x2.shape
    assert jnp.allclose(out2, ref2, atol=2e-2, rtol=2e-2), "mismatch vs reference (padded)"

    # Case 3: tiny weight budget forces the H-tiled (streamed weights + accumulator) path.
    D3, H3 = 128, 512
    x3 = jax.random.normal(k5, (batch, seq, D3), dtype=jnp.float32)
    raw3 = _make_params(k6, D3, H3)
    prepped3 = prepare_ffn_params(*raw3, weight_budget_bytes=1 << 16)   # -> tH=128, 4 hidden steps
    assert prepped3["h_pad"] // prepped3["t_h"] > 1
    out3 = jax.block_until_ready(position_wise_ffn(x3, prepped3))
    ref3 = reference(x3, *raw3)
    assert out3.shape == x3.shape
    assert jnp.allclose(out3, ref3, atol=2e-2, rtol=2e-2), "mismatch vs reference (H-tiled)"

    print("KERNEL_OK")
</pallas_src>

<mosaic_0001>
module attributes {stable_mosaic.version = 11 : i64} {
  func.func @ffn_kernel(%arg0: i32, %arg1: i32, %arg2: memref<16x128xf32, #tpu.memory_space<vmem>>, %arg3: memref<128x256xbf16, #tpu.memory_space<vmem>>, %arg4: memref<1x256xf32, #tpu.memory_space<vmem>>, %arg5: memref<256x128xbf16, #tpu.memory_space<vmem>>, %arg6: memref<1x128xf32, #tpu.memory_space<vmem>>, %arg7: memref<1x128xf32, #tpu.memory_space<vmem>>, %arg8: memref<1x128xf32, #tpu.memory_space<vmem>>, %arg9: memref<16x128xf32, #tpu.memory_space<vmem>>, %arg10: memref<16x128xf32, #tpu.memory_space<vmem>>) attributes {dimension_semantics = [#tpu.dimension_semantics<parallel>, #tpu.dimension_semantics<arbitrary>], iteration_bounds = array<i64: 1, 1>, scalar_prefetch = 0 : i64, scratch_operands = 1 : i64, tpu.core_type = #tpu.core_type<tc>, window_params = [{transform_indices = @transform_0, window_bounds = array<i64: 16, 128>}, {pipeline_mode = #tpu.pipeline_mode<synchronous>, transform_indices = @transform_1, window_bounds = array<i64: 128, 256>}, {pipeline_mode = #tpu.pipeline_mode<synchronous>, transform_indices = @transform_2, window_bounds = array<i64: 1, 256>}, {pipeline_mode = #tpu.pipeline_mode<synchronous>, transform_indices = @transform_3, window_bounds = array<i64: 256, 128>}, {pipeline_mode = #tpu.pipeline_mode<synchronous>, transform_indices = @transform_4, window_bounds = array<i64: 1, 128>}, {pipeline_mode = #tpu.pipeline_mode<synchronous>, transform_indices = @transform_5, window_bounds = array<i64: 1, 128>}, {pipeline_mode = #tpu.pipeline_mode<synchronous>, transform_indices = @transform_6, window_bounds = array<i64: 1, 128>}, {transform_indices = @transform_7, window_bounds = array<i64: 16, 128>}]} {
    %c0_i32 = arith.constant 0 : i32
    %0 = arith.cmpi eq, %arg1, %c0_i32 : i32
    %1 = arith.extui %0 : i1 to i32
    %c0_i32_0 = arith.constant 0 : i32
    %2 = arith.cmpi ne, %1, %c0_i32_0 : i32
    scf.if %2 {
      %cst_16 = arith.constant 0.000000e+00 : f32
      %21 = vector.broadcast %cst_16 : f32 to vector<16x128xf32>
      %c0_17 = arith.constant 0 : index
      %c0_18 = arith.constant 0 : index
      %22 = vector.load %arg10[%c0_17, %c0_18] : memref<16x128xf32, #tpu.memory_space<vmem>>, vector<16x128xf32>
      tpu.vector_store %arg10[%c0_17, %c0_18], %21 {strides = array<i32>} : memref<16x128xf32, #tpu.memory_space<vmem>>, vector<16x128xf32>,
    } else {
    }
    %c0 = arith.constant 0 : index
    %c0_1 = arith.constant 0 : index
    %3 = vector.load %arg2[%c0, %c0_1] : memref<16x128xf32, #tpu.memory_space<vmem>>, vector<16x128xf32>
    %4 = arith.truncf %3 : vector<16x128xf32> to vector<16x128xbf16>
    %c0_2 = arith.constant 0 : index
    %c0_3 = arith.constant 0 : index
    %5 = vector.load %arg3[%c0_2, %c0_3] : memref<128x256xbf16, #tpu.memory_space<vmem>>, vector<128x256xbf16>
    %cst = arith.constant dense<0.000000e+00> : vector<16x256xf32>
    %6 = tpu.matmul %4, %5, %cst {dimension_numbers = #tpu.dot_dimension_numbers<[1], [0], [0], [1], [0, 0, 1, 1], [], []>} : vector<16x128xbf16>, vector<128x256xbf16>, vector<16x256xf32> -> vector<16x256xf32>
    %c0_4 = arith.constant 0 : index
    %c0_5 = arith.constant 0 : index
    %7 = vector.load %arg4[%c0_4, %c0_5] : memref<1x256xf32, #tpu.memory_space<vmem>>, vector<1x256xf32>
    %8 = vector.broadcast %7 : vector<1x256xf32> to vector<16x256xf32>
    %9 = arith.addf %6, %8 : vector<16x256xf32>
    %cst_6 = arith.constant 0.000000e+00 : f32
    %10 = vector.broadcast %cst_6 : f32 to vector<16x256xf32>
    %11 = arith.maximumf %9, %10 : vector<16x256xf32>
    %c0_7 = arith.constant 0 : index
    %c0_8 = arith.constant 0 : index
    %12 = vector.load %arg10[%c0_7, %c0_8] : memref<16x128xf32, #tpu.memory_space<vmem>>, vector<16x128xf32>
    %13 = arith.truncf %11 : vector<16x256xf32> to vector<16x256xbf16>
    %c0_9 = arith.constant 0 : index
    %c0_10 = arith.constant 0 : index
    %14 = vector.load %arg5[%c0_9, %c0_10] : memref<256x128xbf16, #tpu.memory_space<vmem>>, vector<256x128xbf16>
    %cst_11 = arith.constant dense<0.000000e+00> : vector<16x128xf32>
    %15 = tpu.matmul %13, %14, %cst_11 {dimension_numbers = #tpu.dot_dimension_numbers<[1], [0], [0], [1], [0, 0, 1, 1], [], []>} : vector<16x256xbf16>, vector<256x128xbf16>, vector<16x128xf32> -> vector<16x128xf32>
    %16 = arith.addf %12, %15 : vector<16x128xf32>
    %c0_12 = arith.constant 0 : index
    %c0_13 = arith.constant 0 : index
    %17 = vector.load %arg10[%c0_12, %c0_13] : memref<16x128xf32, #tpu.memory_space<vmem>>, vector<16x128xf32>
    tpu.vector_store %arg10[%c0_12, %c0_13], %16 {strides = array<i32>} : memref<16x128xf32, #tpu.memory_space<vmem>>, vector<16x128xf32>,
    %c0_i32_14 = arith.constant 0 : i32
    %18 = arith.cmpi eq, %arg1, %c0_i32_14 : i32
    %19 = arith.extui %18 : i1 to i32
    %c0_i32_15 = arith.constant 0 : i32
    %20 = arith.cmpi ne, %19, %c0_i32_15 : i32
    scf.if %20 {
      %c0_16 = arith.constant 0 : index
      %c0_17 = arith.constant 0 : index
      %21 = vector.load %arg10[%c0_16, %c0_17] : memref<16x128xf32, #tpu.memory_space<vmem>>, vector<16x128xf32>
      %c0_18 = arith.constant 0 : index
      %c0_19 = arith.constant 0 : index
      %22 = vector.load %arg6[%c0_18, %c0_19] : memref<1x128xf32, #tpu.memory_space<vmem>>, vector<1x128xf32>
      %23 = vector.broadcast %22 : vector<1x128xf32> to vector<16x128xf32>
      %24 = arith.addf %21, %23 : vector<16x128xf32>
      %c0_20 = arith.constant 0 : index
      %c0_21 = arith.constant 0 : index
      %25 = vector.load %arg2[%c0_20, %c0_21] : memref<16x128xf32, #tpu.memory_space<vmem>>, vector<16x128xf32>
      %26 = arith.addf %24, %25 : vector<16x128xf32>
      %cst_22 = arith.constant dense<0.000000e+00> : vector<16xf32>
      %27 = vector.multi_reduction <add>, %26, %cst_22 [1] : vector<16x128xf32> to vector<16xf32>
      %28 = vector.shape_cast %27 : vector<16xf32> to vector<16x1xf32>
      %cst_23 = arith.constant 1.280000e+02 : f32
      %29 = vector.broadcast %cst_23 : f32 to vector<16x1xf32>
      %30 = arith.divf %28, %29 : vector<16x1xf32>
      %31 = vector.broadcast %30 : vector<16x1xf32> to vector<16x128xf32>
      %32 = arith.subf %26, %31 : vector<16x128xf32>
      %33 = arith.mulf %32, %32 : vector<16x128xf32>
      %cst_24 = arith.constant dense<0.000000e+00> : vector<16xf32>
      %34 = vector.multi_reduction <add>, %33, %cst_24 [1] : vector<16x128xf32> to vector<16xf32>
      %35 = vector.shape_cast %34 : vector<16xf32> to vector<16x1xf32>
      %cst_25 = arith.constant 1.280000e+02 : f32
      %36 = vector.broadcast %cst_25 : f32 to vector<16x1xf32>
      %37 = arith.divf %35, %36 : vector<16x1xf32>
      %cst_26 = arith.constant 9.99999997E-7 : f32
      %38 = vector.broadcast %cst_26 : f32 to vector<16x1xf32>
      %39 = arith.addf %37, %38 : vector<16x1xf32>
      %40 = math.rsqrt %39 : vector<16x1xf32>
      %41 = vector.broadcast %40 : vector<16x1xf32> to vector<16x128xf32>
      %42 = arith.mulf %32, %41 : vector<16x128xf32>
      %c0_27 = arith.constant 0 : index
      %c0_28 = arith.constant 0 : index
      %43 = vector.load %arg7[%c0_27, %c0_28] : memref<1x128xf32, #tpu.memory_space<vmem>>, vector<1x128xf32>
      %44 = vector.broadcast %43 : vector<1x128xf32> to vector<16x128xf32>
      %45 = arith.mulf %42, %44 : vector<16x128xf32>
      %c0_29 = arith.constant 0 : index
      %c0_30 = arith.constant 0 : index
      %46 = vector.load %arg8[%c0_29, %c0_30] : memref<1x128xf32, #tpu.memory_space<vmem>>, vector<1x128xf32>
      %47 = vector.broadcast %46 : vector<1x128xf32> to vector<16x128xf32>
      %48 = arith.addf %45, %47 : vector<16x128xf32>
      %c0_31 = arith.constant 0 : index
      %c0_32 = arith.constant 0 : index
      %49 = vector.load %arg9[%c0_31, %c0_32] : memref<16x128xf32, #tpu.memory_space<vmem>>, vector<16x128xf32>
      tpu.vector_store %arg9[%c0_31, %c0_32], %48 {strides = array<i32>} : memref<16x128xf32, #tpu.memory_space<vmem>>, vector<16x128xf32>,
    } else {
    }
    return
  }
  func.func @transform_0(%arg0: i32, %arg1: i32) -> (i32, i32) {
    %c0_i32 = arith.constant 0 : i32
    %c0_i32_0 = arith.constant 0 : i32
    return %arg0, %c0_i32 : i32, i32
  }
  func.func @transform_1(%arg0: i32, %arg1: i32) -> (i32, i32) {
    %c0_i32 = arith.constant 0 : i32
    %c0_i32_0 = arith.constant 0 : i32
    return %c0_i32, %arg1 : i32, i32
  }
  func.func @transform_2(%arg0: i32, %arg1: i32) -> (i32, i32) {
    %c0_i32 = arith.constant 0 : i32
    %c0_i32_0 = arith.constant 0 : i32
    return %c0_i32, %arg1 : i32, i32
  }
  func.func @transform_3(%arg0: i32, %arg1: i32) -> (i32, i32) {
    %c0_i32 = arith.constant 0 : i32
    %c0_i32_0 = arith.constant 0 : i32
    return %arg1, %c0_i32 : i32, i32
  }
  func.func @transform_4(%arg0: i32, %arg1: i32) -> (i32, i32) {
    %c0_i32 = arith.constant 0 : i32
    %c0_i32_0 = arith.constant 0 : i32
    %c0_i32_1 = arith.constant 0 : i32
    return %c0_i32, %c0_i32_0 : i32, i32
  }
  func.func @transform_5(%arg0: i32, %arg1: i32) -> (i32, i32) {
    %c0_i32 = arith.constant 0 : i32
    %c0_i32_0 = arith.constant 0 : i32
    %c0_i32_1 = arith.constant 0 : i32
    return %c0_i32, %c0_i32_0 : i32, i32
  }
  func.func @transform_6(%arg0: i32, %arg1: i32) -> (i32, i32) {
    %c0_i32 = arith.constant 0 : i32
    %c0_i32_0 = arith.constant 0 : i32
    %c0_i32_1 = arith.constant 0 : i32
    return %c0_i32, %c0_i32_0 : i32, i32
  }
  func.func @transform_7(%arg0: i32, %arg1: i32) -> (i32, i32) {
    %c0_i32 = arith.constant 0 : i32
    %c0_i32_0 = arith.constant 0 : i32
    return %arg0, %c0_i32 : i32, i32
  }
}

</mosaic_0001>

<bundles_post_ra>
// kernel: tpu_custom_call.1
= control target key start
LH: loop header
LB: loop body
LE: loop exit
PB: predicated region body
PF: predicated region fallthrough
CT: control target
= control target key end

     0   :  { %12 = vsyncpa [#allocation4], 0  ;;  %s818_s0 = inlined_call_operand.hbm [shape: f32[16,128], index: 0, kind: input, shape index: {}]   ;;  %s819_s1 = inlined_call_operand.hbm [shape: bf16[128,256], index: 1, kind: input, shape index: {}]   ;;  %s820_s2 = inlined_call_operand.vmem [shape: f32[1,256], index: 2, kind: input, shape index: {}]   ;;  %s821_s3 = inlined_call_operand.hbm [shape: bf16[256,128], index: 3, kind: input, shape index: {}]   ;;  %s822_s4 = inlined_call_operand.vmem [shape: f32[1,128], index: 4, kind: input, shape index: {}]   ;;  %s823_s5 = inlined_call_operand.vmem [shape: f32[1,128], index: 5, kind: input, shape index: {}]   ;;  %s824_s6 = inlined_call_operand.vmem [shape: f32[1,128], index: 6, kind: input, shape index: {}]   ;;  %s825_s7 = inlined_call_operand.hbm [shape: f32[16,128], index: 7, kind: output, shape index: {}]  }
   0x1   :  { %13 = vsyncpa [#allocation7], 0 }
   0x2   :  { %14 = vsyncpa [#allocation5], 0  ;;  %s693_s24 = smov [#allocation6]   ;;  %s694_s26 = smov [#allocation3]  }
   0x3   :  { %s32_s25 = sshll.u32 %s693_s24, 4  ;;  %s20_s27 = sshll.u32 %s694_s26, 4  ;;  %s33_s25 = int_to_ptr.vmem [resolvable:$true] %s32_s25  ;;  %s742_s27 = int_to_ptr.vmem [resolvable:$true] %s20_s27 }
   0x4   :  { %s599_s30 = scalar_lea.hbm %s819_s1, 2048 }
   0x5   :  { %p600_p0 = scmp.ne.s32.totalorder %s819_s1, %s599_s30  ;;  %p603_p1 = scmp.lt.u32.totalorder %s599_s30, %s819_s1 }
   0x7   :  { %p605_p2 = pnand %p603_p1, %p600_p0 }
   0x9   :  { %608 = shalt.err (!%p605_p2)
}
   0xa   :  { %s609_s12 = scalar_lea.vmem %s33_s25, 2048  ;;  %p614_p4 = scmp.lt.s32.totalorder %s33_s25, %s33_s25 }
   0xb   :  { %p610_p3 = scmp.ne.s32.totalorder %s33_s25, %s609_s12  ;;  %p615_p5 = scmp.lt.s32.totalorder %s609_s12, %s609_s12 }
   0xd   :  { %p616_p6 = por %p615_p5, %p614_p4 }
   0xf   :  { %p617_p7 = pnand %p616_p6, %p610_p3 }
  0x11   :  { %620 = shalt.err (!%p617_p7)
}
  0x12   :  { %s695_s13 = smov 128   ;;  %s696_s14 = smov 8  }
  0x13   :  { %38 = dma.hbm_to_vmem [thread:$0]  %s819_s1, 2048, %s33_s25, [#allocation7], %s695_s13, %s695_s13, %s696_s14  }
  0x14   :  { %s621_s19 = scalar_lea.hbm %s818_s0, 256 }
  0x15   :  { %p622_p8 = scmp.ne.s32.totalorder %s818_s0, %s621_s19  ;;  %p625_p9 = scmp.lt.u32.totalorder %s621_s19, %s818_s0 }
  0x17   :  { %p627_p10 = pnand %p625_p9, %p622_p8 }
  0x19   :  { %630 = shalt.err (!%p627_p10)
}
  0x1a   :  { %s631_s24 = scalar_lea.vmem %s742_s27, 256  ;;  %p636_p12 = scmp.lt.s32.totalorder %s742_s27, %s742_s27 }
  0x1b   :  { %p632_p11 = scmp.ne.s32.totalorder %s742_s27, %s631_s24  ;;  %p637_p13 = scmp.lt.s32.totalorder %s631_s24, %s631_s24 }
  0x1d   :  { %p638_p0 = por %p637_p13, %p636_p12 }
  0x1f   :  { %p639_p1 = pnand %p638_p0, %p632_p11 }
  0x21   :  { %642 = shalt.err (!%p639_p1)
}
  0x22   :  { %26 = dma.hbm_to_vmem [thread:$0]  %s818_s0, 256, %s742_s27, [#allocation4], %s695_s13, %s695_s13, %s696_s14  }
  0x23   :  { %s697_s26 = smov [#allocation8]   ;;  %s643_s8 = scalar_lea.hbm %s821_s3, 2048 }
  0x24   :  { %s46_s28 = sshll.u32 %s697_s26, 4  ;;  %p644_p2 = scmp.ne.s32.totalorder %s821_s3, %s643_s8  ;;  %s47_s28 = int_to_ptr.vmem [resolvable:$true] %s46_s28 }
  0x25   :  { %p647_p3 = scmp.lt.u32.totalorder %s643_s8, %s821_s3 }
  0x27   :  { %p649_p4 = pnand %p647_p3, %p644_p2 }
  0x29   :  { %652 = shalt.err (!%p649_p4)
}
  0x2a   :  { %s653_s15 = scalar_lea.vmem %s47_s28, 2048  ;;  %p658_p6 = scmp.lt.s32.totalorder %s47_s28, %s47_s28 }
  0x2b   :  { %p654_p5 = scmp.ne.s32.totalorder %s47_s28, %s653_s15  ;;  %p659_p7 = scmp.lt.s32.totalorder %s653_s15, %s653_s15 }
  0x2d   :  { %p660_p8 = por %p659_p7, %p658_p6 }
  0x2f   :  { %p661_p9 = pnand %p660_p8, %p654_p5 }
  0x31   :  { %664 = shalt.err (!%p661_p9)
}
  0x32   :  { %s698_s0 = smov 64   ;;  %s699_s27 = smov 4  }
  0x33   :  { %52 = dma.hbm_to_vmem [thread:$0]  %s821_s3, 2048, %s47_s28, [#allocation7], %s698_s0, %s698_s0, %s699_s27  }
  0x34   :  { %687 = dma.done.wait [#allocation4], 256  }
  0x35   :  { %688 = vsyncadd [#allocation4], 4294967040 }
  0x36   :  { %689 = dma.done.wait [#allocation7], 4096  }
  0x37   :  { %690 = vsyncadd [#allocation7], 4294963200  ;;  %v700_v0 = vmov 0   ;;  %v555_v1 = vld [vmem:[#allocation6 + $0x4] ss:$8 sps:$4 sm:$0xff]   ;;  %v583_v16 = vld [vmem:[#allocation8 + $0x50] sm:$0xff]   ;;  %v96_v36 = vlaneseq }
  0x38   :  { %218 = vmatprep.mubr.bf16.mxu0 %v700_v0  ;;  %v557_v2 = vld [vmem:[#allocation6] ss:$8 sps:$4 sm:$0xff]   ;;  %186 = vmatprep.subr.bf16.mxu0 %v555_v1  ;;  %v558_v3 = vld [vmem:[#allocation6 + $0x14] ss:$8 sps:$4 sm:$0xff]   ;;  %v560_v4 = vld [vmem:[#allocation6 + $0x10] ss:$8 sps:$4 sm:$0xff]  }
  0x39   :  { %187 = vmatpush1.bf16.msra.mxu0 %v557_v2  ;;  %v561_v5 = vld [vmem:[#allocation6 + $0x24] ss:$8 sps:$4 sm:$0xff]   ;;  %v563_v6 = vld [vmem:[#allocation6 + $0x20] ss:$8 sps:$4 sm:$0xff]   ;;  %v564_v7 = vld [vmem:[#allocation6 + $0x34] ss:$8 sps:$4 sm:$0xff]  }
  0x3a   :  { %188 = vmatprep.subr.bf16.mxu0 %v558_v3  ;;  %v566_v8 = vld [vmem:[#allocation6 + $0x30] ss:$8 sps:$4 sm:$0xff]   ;;  %v567_v9 = vld [vmem:[#allocation6 + $0x44] ss:$8 sps:$4 sm:$0xff]   ;;  %v569_v11 = vld [vmem:[#allocation6 + $0x40] ss:$8 sps:$4 sm:$0xff]  }
  0x3b   :  { %v579_v10 = vld [vmem:[#allocation8 + $0x40] sm:$0xff]   ;;  %v570_v13 = vld [vmem:[#allocation6 + $0x54] ss:$8 sps:$4 sm:$0xff]   ;;  %v581_v14 = vld [vmem:[#allocation8 + $0x48] sm:$0xff]   ;;  %v97_v37 = vshrl.u32 %v96_v36, 7  ;;  %s701_s23 = smov [#allocation9]  }
  0x3c   :  { %v580_v12 = vld [vmem:[#allocation8] sm:$0xff]   ;;  %524 = vmatprep.subr.bf16.mxu1 %v579_v10  ;;  %v582_v15 = vld [vmem:[#allocation8 + $0x8] sm:$0xff]   ;;  %v572_v17 = vld [vmem:[#allocation6 + $0x50] ss:$8 sps:$4 sm:$0xff]   ;;  %s476_s24 = sshll.u32 %s701_s23, 4  ;;  %s477_s24 = int_to_ptr.vmem [resolvable:$true] %s476_s24 }
  0x3d   :  { %189 = vmatpush1.bf16.msra.mxu0 %v560_v4  ;;  %525 = vmatpush3.bf16.msra.mxu1 %v580_v12  ;;  %v573_v18 = vld [vmem:[#allocation6 + $0x64] ss:$8 sps:$4 sm:$0xff]   ;;  %v584_v19 = vld [vmem:[#allocation8 + $0x10] sm:$0xff]   ;;  %v585_v20 = vld [vmem:[#allocation8 + $0x58] sm:$0xff]   ;;  %v98_v38 = vsub.s32 0, %v97_v37  ;;  %v102_v40 = vsub.s32 1, %v97_v37  ;;  %p670_p11 = scmp.lt.s32.totalorder %s477_s24, %s477_s24 }
  0x3e   :  { %190 = vmatprep.subr.bf16.mxu0 %v561_v5  ;;  %526 = vmatprep.subr.bf16.mxu1 %v581_v14  ;;  %v575_v21 = vld [vmem:[#allocation6 + $0x60] ss:$8 sps:$4 sm:$0xff]   ;;  %v576_v22 = vld [vmem:[#allocation6 + $0x74] ss:$8 sps:$4 sm:$0xff]   ;;  %v578_v25 = vld [vmem:[#allocation6 + $0x70] ss:$8 sps:$4 sm:$0xff]  }
  0x3f   :  { %v586_v23 = vld [vmem:[#allocation8 + $0x18] sm:$0xff]   ;;  %v587_v24 = vld [vmem:[#allocation8 + $0x60] sm:$0xff]   ;;  %v75_v26 = vld [vmem:[#allocation3] sm:$0xff]  ;;  %s665_s1 = scalar_lea.vmem %s477_s24, 256 }
  0x40   :  { %v76_v27 = vld [vmem:[#allocation3 + $0x8] sm:$0xff]  ;;  %v588_v28 = vld [vmem:[#allocation8 + $0x20] sm:$0xff]   ;;  %v589_v29 = vld [vmem:[#allocation8 + $0x68] sm:$0xff]   ;;  %p666_p10 = scmp.ne.s32.totalorder %s477_s24, %s665_s1  ;;  %p671_p12 = scmp.lt.s32.totalorder %s665_s1, %s665_s1 }
  0x41   :  { %191 = vmatpush1.bf16.msra.mxu0 %v563_v6  ;;  %527 = vmatpush3.bf16.msra.mxu1 %v582_v15  ;;  %v77_v30 = vpack.c.bf16 %v76_v27, %v75_v26  ;;  %v590_v31 = vld [vmem:[#allocation8 + $0x28] sm:$0xff]   ;;  %v591_v32 = vld [vmem:[#allocation8 + $0x70] sm:$0xff]   ;;  %v593_v34 = vld [vmem:[#allocation8 + $0x78] sm:$0xff]  }
  0x42   :  { %192 = vmatprep.subr.bf16.mxu0 %v564_v7  ;;  %528 = vmatprep.subr.bf16.mxu1 %v583_v16  ;;  %v592_v33 = vld [vmem:[#allocation8 + $0x30] sm:$0xff]   ;;  %v594_v35 = vld [vmem:[#allocation8 + $0x38] sm:$0xff]   ;;  %p672_p13 = por %p671_p12, %p670_p11 }
  0x43   :  { %v94_v39 = vld [vmem:[%s820_s2] sm:$0x3] }
  0x44   :  { %v99_v41 = vrot.slane %v94_v39, %v98_v38  ;;  %v103_v42 = vrot.slane %v94_v39, %v102_v40  ;;  %v521_v59 = vld [vmem:[%s822_s4] ss:$0 sm:$0xff]  ;;  %p673_p0 = pnand %p672_p13, %p666_p10 }
  0x45   :  { %193 = vmatpush1.bf16.msra.mxu0 %v566_v8  ;;  %529 = vmatpush3.bf16.msra.mxu1 %v584_v19  ;;  %v522_v19 = vld [vmem:[%s823_s5] ss:$0 sm:$0xff] }
  0x46   :  { %194 = vmatprep.subr.bf16.mxu0 %v567_v9  ;;  %530 = vmatprep.subr.bf16.mxu1 %v585_v20 }
  0x49   :  { %195 = vmatpush1.bf16.msra.mxu0 %v569_v11  ;;  %531 = vmatpush3.bf16.msra.mxu1 %v586_v23 }
  0x4a   :  { %196 = vmatprep.subr.bf16.mxu0 %v570_v13  ;;  %532 = vmatprep.subr.bf16.mxu1 %v587_v24 }
  0x4d   :  { %197 = vmatpush1.bf16.msra.mxu0 %v572_v17  ;;  %533 = vmatpush3.bf16.msra.mxu1 %v588_v28 }
  0x4e   :  { %198 = vmatprep.subr.bf16.mxu0 %v573_v18  ;;  %534 = vmatprep.subr.bf16.mxu1 %v589_v29 }
  0x51   :  { %199 = vmatpush1.bf16.msra.mxu0 %v575_v21  ;;  %535 = vmatpush3.bf16.msra.mxu1 %v590_v31  ;;  %v523_v21 = vld [vmem:[%s824_s6] ss:$0 sm:$0xff] }
  0x52   :  { %200 = vmatprep.subr.bf16.mxu0 %v576_v22  ;;  %536 = vmatprep.subr.bf16.mxu1 %v591_v32 }
  0x55   :  { %201 = vmatpush1.bf16.msra.mxu0 %v578_v25  ;;  %537 = vmatpush3.bf16.msra.mxu1 %v592_v33 }
  0x56   :  { %538 = vmatprep.subr.bf16.mxu1 %v593_v34 }
  0x58   :  { %219 = vmatmul.mubr.bf16.vlgmr.msra.gmra.mrb[0].mxu0 %v77_v30 }
  0x59   :  { %539 = vmatpush3.bf16.msra.mxu1 %v594_v35 }
 0x12b   :  { %v220_v43 = vpop.f32.mrb[0].mxu0 }
 0x12c   :  { %v221_v44 = vadd.f32 %v220_v43, %v99_v41  ;;  %v222_v45 = vpop.f32.mrb[1].mxu0 }
 0x12d   :  { %v223_v46 = vadd.f32 %v222_v45, %v103_v42  ;;  %v224_v47 = vpop.f32.mrb[2].mxu0 }
 0x12e   :  { %v225_v48 = vadd.f32 %v224_v47, %v99_v41  ;;  %v226_v49 = vpop.f32.mrb[3].mxu0  ;;  %v229_v51 = vmax.f32 %v221_v44, 0.0 }
 0x12f   :  { %v227_v50 = vadd.f32 %v226_v49, %v103_v42  ;;  %v230_v53 = vmax.f32 %v223_v46, 0.0 }
 0x130   :  { %v231_v52 = vmax.f32 %v225_v48, 0.0 }
 0x131   :  { %v232_v54 = vmax.f32 %v227_v50, 0.0 }
 0x132   :  { %v235_v55 = vpack.c.bf16 %v231_v52, %v229_v51 }
 0x133   :  { %v236_v56 = vpack.c.bf16 %v232_v54, %v230_v53 }
 0x135   :  { %397 = vmatprep.mubr.bf16.mxu1 %v236_v56 }
 0x136   :  { %398 = vmatmul.mubr.bf16.vlgmr.msra.gmra.mrb[0].mxu1 %v235_v55 }
 0x209   :  { %v540_v57 = vpop.f32.mrb[0].mxu1 }
 0x20a   :  { %v541_v58 = vpop.f32.mrb[1].mxu1 }
 0x20b   :  { %v542_v60 = vadd.f32 %v541_v58, %v540_v57  ;;  %v543_v61 = vpop.f32.mrb[2].mxu1 }
 0x20c   :  { %v544_v62 = vpop.f32.mrb[3].mxu1 }
 0x20d   :  { %v422_v63 = vadd.f32 %v542_v60, %v521_v59  ;;  %v545_v0 = vadd.f32 %v544_v62, %v543_v61 }
 0x20f   :  { %v423_v1 = vadd.f32 %v545_v0, %v521_v59  ;;  %v426_v2 = vadd.f32 %v422_v63, %v75_v26 }
 0x211   :  { %428 = vadd.xlane.f32.xlu0 %v426_v2  ;;  %v427_v3 = vadd.f32 %v423_v1, %v76_v27 }
 0x215   :  { %430 = vadd.xlane.f32.xlu0 %v427_v3 }
 0x29e   :  { %v429_v4 = vpop.xlane.xlu0 %428 }
 0x29f   :  { %v433_v5 = vmul.f32 0.0078125, %v429_v4 }
 0x2a1   :  { %v435_v6 = vsub.f32 %v426_v2, %v433_v5 }
 0x2a2   :  { %v431_v7 = vpop.xlane.xlu0 %430 }
 0x2a3   :  { %v434_v8 = vmul.f32 0.0078125, %v431_v7  ;;  %v437_v9 = vmul.f32 %v435_v6, %v435_v6 }
 0x2a5   :  { %v436_v10 = vsub.f32 %v427_v3, %v434_v8  ;;  %439 = vadd.xlane.f32.xlu1 %v437_v9 }
 0x2a7   :  { %v438_v11 = vmul.f32 %v436_v10, %v436_v10 }
 0x2a9   :  { %441 = vadd.xlane.f32.xlu1 %v438_v11 }
 0x332   :  { %v440_v12 = vpop.xlane.xlu1 %439 }
 0x333   :  { %v443_v13 = vmul.f32 0.0078125, %v440_v12 }
 0x335   :  { %v445_v14 = vadd.f32 1e-06, %v443_v13 }
 0x336   :  { %v442_v15 = vpop.xlane.xlu1 %441 }
 0x337   :  { %595 = vrsqrt.f32 %v445_v14  ;;  %v444_v16 = vmul.f32 0.0078125, %v442_v15 }
 0x339   :  { %v446_v17 = vadd.f32 1e-06, %v444_v16 }
 0x33b   :  { %597 = vrsqrt.f32 %v446_v17 }
 0x341   :  { %v596_v18 = vpop.eup %595 }
 0x342   :  { %v449_v20 = vmul.f32 %v596_v18, %v435_v6 }
 0x344   :  { %v458_v22 = vmul.f32 %v522_v19, %v449_v20 }
 0x345   :  { %v598_v23 = vpop.eup %597 }
 0x346   :  { %v450_v24 = vmul.f32 %v598_v23, %v436_v10  ;;  %v467_v25 = vadd.f32 %v523_v21, %v458_v22 }
 0x348   :  { %v459_v26 = vmul.f32 %v522_v19, %v450_v24  ;;  %469 = vst [vmem:[#allocation9] sm:$0xff] %v467_v25 }
 0x34a   :  { %v468_v27 = vadd.f32 %v523_v21, %v459_v26 }
 0x34c   :  { %470 = vst [vmem:[#allocation9 + $0x8] sm:$0xff] %v468_v27 }
 0x34d   :  { %676 = shalt.err (!%p673_p0)
}
 0x34e   :  { %s677_s25 = scalar_lea.hbm %s825_s7, 256 }
 0x34f   :  { %p678_p1 = scmp.ne.s32.totalorder %s825_s7, %s677_s25  ;;  %p681_p2 = scmp.lt.u32.totalorder %s677_s25, %s825_s7 }
 0x351   :  { %p683_p3 = pnand %p681_p2, %p678_p1 }
 0x353   :  { %686 = shalt.err (!%p683_p3)
}
 0x354   :  { %482 = dma.vmem_to_hbm [thread:$0]  %s477_s24, 256, %s825_s7, [#allocation5], %s695_s13, %s695_s13, %s696_s14  }
 0x355   :  { %691 = dma.done.wait [#allocation5], 256  }
 0x356   :  { %692 = vsyncadd [#allocation5], 4294967040 }
 0x357   :  { %486 = vsyncpa [#allocation4], 1 }
 0x358   :  { %487 = vsyncpa [#allocation7], 1 }
 0x359   :  { %488 = vsyncpa [#allocation5], 1 }

</bundles_post_ra>
